<compile_context>
chip_gen: v5e
topology: v5e:2x2
jax: 0.10.0
libtpu: 0.0.40
codegen_flags: <defaults>
</compile_context>

<pallas_src>
import jax
import jax.numpy as jnp
from jax import lax
from jax.experimental import pallas as pl
from jax.experimental.pallas import tpu as pltpu


def _attention_kernel(x_ref, y_ref, xa_ref, ya_ref, a_ref,
                      m1_ref, s1_ref, acc_ref):
    """One (batch, Lx-tile) grid step.

    Blocks:
      x_ref  : (1, TLx, H)   streams over the Lx grid axis
      y_ref  : (1, Ly,  H)   resident across the Lx grid axis
      xa_ref : (1, TLx, H)
      ya_ref : (1, Ly,  H)   resident across the Lx grid axis (reduction out)
      a_ref  : (1, TLx, Ly)
    Scratch (persists across grid steps, re-initialized per batch):
      m1_ref : (1, Ly)  running column max of the scores (softmax over Lx)
      s1_ref : (1, Ly)  running column sum of exp
      acc_ref: (Ly, H)  running un-normalized y_atten accumulator (f32)
    """
    i = pl.program_id(1)
    n_lx = pl.num_programs(1)

    x = x_ref[0]                                 # (TLx, H)
    y = y_ref[0]                                 # (Ly, H)

    # a = x @ y^T: contract H on both operands -> no XLU transpose.
    a = lax.dot_general(x, y, dimension_numbers=(((1,), (1,)), ((), ())),
                        preferred_element_type=jnp.float32)       # (TLx, Ly)
    a_ref[0] = a.astype(a_ref.dtype)

    # ---- x_atten: softmax over Ly (exact within this Lx tile) --------------
    m2 = jnp.max(a, axis=1, keepdims=True)                         # (TLx, 1)
    e2 = jnp.exp(a - m2)                                           # (TLx, Ly)
    inv2 = pl.reciprocal(jnp.sum(e2, axis=1, keepdims=True), approx=True)
    p2 = (e2 * inv2).astype(y.dtype)     # feed the MXU in the input dtype
    xa_ref[0] = lax.dot_general(
        p2, y, dimension_numbers=(((1,), (0,)), ((), ())),
        preferred_element_type=jnp.float32).astype(xa_ref.dtype)

    # ---- y_atten: softmax over Lx, streamed online across Lx tiles ---------
    @pl.when(i == 0)
    def _init():
        m1_ref[...] = jnp.full_like(m1_ref, -jnp.inf)
        s1_ref[...] = jnp.zeros_like(s1_ref)
        acc_ref[...] = jnp.zeros_like(acc_ref)

    m1_old = m1_ref[...]                                           # (1, Ly)
    m1_new = jnp.maximum(m1_old, jnp.max(a, axis=0, keepdims=True))
    alpha = jnp.exp(m1_old - m1_new)                               # (1, Ly)
    # NOTE: a second full exp is kept on purpose (instead of deriving it from
    # e2 via exp(m2)*exp(-m1)): the module applies no 1/sqrt(H) scaling, so
    # the factorized form can overflow f32 for large H.
    e1 = jnp.exp(a - m1_new)                                       # (TLx, Ly)
    s1_ref[...] = alpha * s1_ref[...] + jnp.sum(e1, axis=0, keepdims=True)
    # contribution = e1^T @ x, expressed by contracting axis 0 of both
    # operands -> no (TLx,Ly) transpose.
    contrib = lax.dot_general(
        e1.astype(x.dtype), x, dimension_numbers=(((0,), (0,)), ((), ())),
        preferred_element_type=jnp.float32)                        # (Ly, H)
    acc_ref[...] = acc_ref[...] * jnp.transpose(alpha) + contrib
    m1_ref[...] = m1_new

    @pl.when(i == n_lx - 1)
    def _finalize():
        inv1 = pl.reciprocal(s1_ref[...], approx=True)             # (1, Ly)
        ya_ref[0] = (acc_ref[...] * jnp.transpose(inv1)).astype(ya_ref.dtype)


def _pick_block_lx(lx):
    for t in (512, 256, 128):
        if lx % t == 0:
            return t
    return lx  # fall back to the full extent for small / odd sequence lengths


def attention_forward(x, y, *, block_lx=None):
    """x: (B, Lx, H), y: (B, Ly, H) -> (x_atten, y_atten, a_)."""
    B, Lx, H = x.shape
    By, Ly, Hy = y.shape
    assert B == By and H == Hy, "batch / hidden dims must match"

    if block_lx is None:
        block_lx = _pick_block_lx(Lx)
    assert Lx % block_lx == 0, "Lx must be divisible by block_lx"
    assert block_lx == Lx or block_lx % 8 == 0, "block_lx must be sublane-aligned"
    n_lx = Lx // block_lx

    return pl.pallas_call(
        _attention_kernel,
        out_shape=(
            jax.ShapeDtypeStruct((B, Lx, H), x.dtype),    # x_atten
            jax.ShapeDtypeStruct((B, Ly, H), x.dtype),    # y_atten
            jax.ShapeDtypeStruct((B, Lx, Ly), x.dtype),   # a_
        ),
        grid_spec=pltpu.PrefetchScalarGridSpec(
            num_scalar_prefetch=0,
            grid=(B, n_lx),
            in_specs=[
                pl.BlockSpec((1, block_lx, H), lambda b, i: (b, i, 0)),
                pl.BlockSpec((1, Ly, H), lambda b, i: (b, 0, 0)),     # resident
            ],
            out_specs=[
                pl.BlockSpec((1, block_lx, H), lambda b, i: (b, i, 0)),
                pl.BlockSpec((1, Ly, H), lambda b, i: (b, 0, 0)),     # resident
                pl.BlockSpec((1, block_lx, Ly), lambda b, i: (b, i, 0)),
            ],
            scratch_shapes=[
                pltpu.VMEM((1, Ly), jnp.float32),    # running column max
                pltpu.VMEM((1, Ly), jnp.float32),    # running column sum
                pltpu.VMEM((Ly, H), jnp.float32),    # y_atten f32 accumulator
            ],
        ),
        compiler_params=pltpu.CompilerParams(
            # B is independent (megacore-shardable); the Lx-tile axis carries
            # the axis-1 softmax reduction for y_atten -> must be "arbitrary".
            dimension_semantics=("parallel", "arbitrary"),
            vmem_limit_bytes=32 * 1024 * 1024,
        ),
    )(x, y)


def _reference(x, y):
    a = jnp.einsum("bld,bkd->blk", x, y)
    x_atten = jnp.einsum("blk,bkd->bld", jax.nn.softmax(a, axis=2), y)
    y_atten = jnp.einsum("bkl,bld->bkd",
                         jax.nn.softmax(a, axis=1).transpose(0, 2, 1), x)
    return x_atten, y_atten, a


if __name__ == "__main__":
    key = jax.random.PRNGKey(0)

    # --- small demo at the module-implied shapes -----------------------------
    B, Lx, Ly, H = 2, 8, 16, 32
    kx, ky, kw, kb = jax.random.split(key, 4)
    x = jax.random.normal(kx, (B, Lx, H), dtype=jnp.float32)
    y = jax.random.normal(ky, (B, Ly, H), dtype=jnp.float32)

    # Deterministic init of the (unused) fc layer, matching nn.Linear(H, H).
    bound = 1.0 / (H ** 0.5)
    fc_w = jax.random.uniform(kw, (H, H), minval=-bound, maxval=bound)
    fc_b = jax.random.uniform(kb, (H,), minval=-bound, maxval=bound)
    # fc is never applied in forward() — kept for parameter-shape parity only.

    x_atten, y_atten, a_ = attention_forward(x, y)
    jax.block_until_ready((x_atten, y_atten, a_))

    rx, ry, ra = _reference(x, y)
    assert jnp.allclose(a_, ra, atol=1e-4, rtol=1e-4)
    assert jnp.allclose(x_atten, rx, atol=5e-3, rtol=5e-3)
    assert jnp.allclose(y_atten, ry, atol=5e-3, rtol=5e-3)

    # --- exercise the multi-tile (online axis-1 softmax) path ----------------
    B2, Lx2, Ly2, H2 = 2, 256, 128, 128
    k1, k2 = jax.random.split(jax.random.PRNGKey(1))
    x2 = jax.random.normal(k1, (B2, Lx2, H2), dtype=jnp.float32)
    y2 = jax.random.normal(k2, (B2, Ly2, H2), dtype=jnp.float32)
    xa2, ya2, a2 = attention_forward(x2, y2, block_lx=128)   # n_lx = 2
    jax.block_until_ready((xa2, ya2, a2))
    rx2, ry2, ra2 = _reference(x2, y2)
    assert jnp.allclose(a2, ra2, atol=1e-2, rtol=1e-2)
    assert jnp.allclose(xa2, rx2, atol=1e-2, rtol=1e-2)
    assert jnp.allclose(ya2, ry2, atol=1e-2, rtol=1e-2)

    print("KERNEL_OK")
</pallas_src>

<mosaic_0001>
module attributes {stable_mosaic.version = 11 : i64} {
  func.func @_attention_kernel(%arg0: i32, %arg1: i32, %arg2: memref<1x8x32xf32, #tpu.memory_space<vmem>>, %arg3: memref<1x16x32xf32, #tpu.memory_space<vmem>>, %arg4: memref<1x8x32xf32, #tpu.memory_space<vmem>>, %arg5: memref<1x16x32xf32, #tpu.memory_space<vmem>>, %arg6: memref<1x8x16xf32, #tpu.memory_space<vmem>>, %arg7: memref<1x16xf32, #tpu.memory_space<vmem>>, %arg8: memref<1x16xf32, #tpu.memory_space<vmem>>, %arg9: memref<16x32xf32, #tpu.memory_space<vmem>>) attributes {dimension_semantics = [#tpu.dimension_semantics<parallel>, #tpu.dimension_semantics<arbitrary>], iteration_bounds = array<i64: 2, 1>, scalar_prefetch = 0 : i64, scratch_operands = 3 : i64, tpu.core_type = #tpu.core_type<tc>, window_params = [{transform_indices = @transform_0, window_bounds = array<i64: 1, 8, 32>}, {transform_indices = @transform_1, window_bounds = array<i64: 1, 16, 32>}, {transform_indices = @transform_2, window_bounds = array<i64: 1, 8, 32>}, {transform_indices = @transform_3, window_bounds = array<i64: 1, 16, 32>}, {transform_indices = @transform_4, window_bounds = array<i64: 1, 8, 16>}]} {
    %c0 = arith.constant 0 : index
    %c0_0 = arith.constant 0 : index
    %c0_1 = arith.constant 0 : index
    %0 = vector.load %arg2[%c0, %c0_0, %c0_1] : memref<1x8x32xf32, #tpu.memory_space<vmem>>, vector<1x8x32xf32>
    %1 = vector.shape_cast %0 : vector<1x8x32xf32> to vector<8x32xf32>
    %c0_2 = arith.constant 0 : index
    %c0_3 = arith.constant 0 : index
    %c0_4 = arith.constant 0 : index
    %2 = vector.load %arg3[%c0_2, %c0_3, %c0_4] : memref<1x16x32xf32, #tpu.memory_space<vmem>>, vector<1x16x32xf32>
    %3 = vector.shape_cast %2 : vector<1x16x32xf32> to vector<16x32xf32>
    %cst = arith.constant dense<0.000000e+00> : vector<8x16xf32>
    %4 = tpu.matmul %1, %3, %cst {dimension_numbers = #tpu.dot_dimension_numbers<[1], [1], [0], [0], [0, 0, 1, 0], [], []>} : vector<8x32xf32>, vector<16x32xf32>, vector<8x16xf32> -> vector<8x16xf32>
    %c0_5 = arith.constant 0 : index
    %c0_6 = arith.constant 0 : index
    %c0_7 = arith.constant 0 : index
    %5 = vector.load %arg6[%c0_5, %c0_6, %c0_7] : memref<1x8x16xf32, #tpu.memory_space<vmem>>, vector<1x8x16xf32>
    %6 = vector.shape_cast %5 : vector<1x8x16xf32> to vector<8x16xf32>
    %7 = vector.shape_cast %4 : vector<8x16xf32> to vector<1x8x16xf32>
    tpu.vector_store %arg6[%c0_5, %c0_6, %c0_7], %7 {strides = array<i32>} : memref<1x8x16xf32, #tpu.memory_space<vmem>>, vector<1x8x16xf32>,
    %cst_8 = arith.constant dense<0xFF800000> : vector<8xf32>
    %8 = vector.multi_reduction <maximumf>, %4, %cst_8 [1] : vector<8x16xf32> to vector<8xf32>
    %9 = vector.shape_cast %8 : vector<8xf32> to vector<8x1xf32>
    %10 = vector.broadcast %9 : vector<8x1xf32> to vector<8x16xf32>
    %11 = arith.subf %4, %10 : vector<8x16xf32>
    %12 = math.exp %11 : vector<8x16xf32>
    %cst_9 = arith.constant dense<0.000000e+00> : vector<8xf32>
    %13 = vector.multi_reduction <add>, %12, %cst_9 [1] : vector<8x16xf32> to vector<8xf32>
    %14 = vector.shape_cast %13 : vector<8xf32> to vector<8x1xf32>
    %15 = tpu.reciprocal %14 {approx = true} : vector<8x1xf32> -> vector<8x1xf32>
    %16 = vector.broadcast %15 : vector<8x1xf32> to vector<8x16xf32>
    %17 = arith.mulf %12, %16 : vector<8x16xf32>
    %cst_10 = arith.constant dense<0.000000e+00> : vector<8x32xf32>
    %18 = tpu.matmul %17, %3, %cst_10 {dimension_numbers = #tpu.dot_dimension_numbers<[1], [0], [0], [1], [0, 0, 1, 1], [], []>} : vector<8x16xf32>, vector<16x32xf32>, vector<8x32xf32> -> vector<8x32xf32>
    %c0_11 = arith.constant 0 : index
    %c0_12 = arith.constant 0 : index
    %c0_13 = arith.constant 0 : index
    %19 = vector.load %arg4[%c0_11, %c0_12, %c0_13] : memref<1x8x32xf32, #tpu.memory_space<vmem>>, vector<1x8x32xf32>
    %20 = vector.shape_cast %19 : vector<1x8x32xf32> to vector<8x32xf32>
    %21 = vector.shape_cast %18 : vector<8x32xf32> to vector<1x8x32xf32>
    tpu.vector_store %arg4[%c0_11, %c0_12, %c0_13], %21 {strides = array<i32>} : memref<1x8x32xf32, #tpu.memory_space<vmem>>, vector<1x8x32xf32>,
    %c0_i32 = arith.constant 0 : i32
    %22 = arith.cmpi eq, %arg1, %c0_i32 : i32
    %23 = arith.extui %22 : i1 to i32
    %c0_i32_14 = arith.constant 0 : i32
    %24 = arith.cmpi ne, %23, %c0_i32_14 : i32
    scf.if %24 {
      %cst_32 = arith.constant 0xFF800000 : f32
      %51 = vector.broadcast %cst_32 : f32 to vector<1x16xf32>
      %c0_33 = arith.constant 0 : index
      %c0_34 = arith.constant 0 : index
      %52 = vector.load %arg7[%c0_33, %c0_34] : memref<1x16xf32, #tpu.memory_space<vmem>>, vector<1x16xf32>
      tpu.vector_store %arg7[%c0_33, %c0_34], %51 {strides = array<i32>} : memref<1x16xf32, #tpu.memory_space<vmem>>, vector<1x16xf32>,
      %cst_35 = arith.constant 0.000000e+00 : f32
      %53 = vector.broadcast %cst_35 : f32 to vector<1x16xf32>
      %c0_36 = arith.constant 0 : index
      %c0_37 = arith.constant 0 : index
      %54 = vector.load %arg8[%c0_36, %c0_37] : memref<1x16xf32, #tpu.memory_space<vmem>>, vector<1x16xf32>
      tpu.vector_store %arg8[%c0_36, %c0_37], %53 {strides = array<i32>} : memref<1x16xf32, #tpu.memory_space<vmem>>, vector<1x16xf32>,
      %cst_38 = arith.constant 0.000000e+00 : f32
      %55 = vector.broadcast %cst_38 : f32 to vector<16x32xf32>
      %c0_39 = arith.constant 0 : index
      %c0_40 = arith.constant 0 : index
      %56 = vector.load %arg9[%c0_39, %c0_40] : memref<16x32xf32, #tpu.memory_space<vmem>>, vector<16x32xf32>
      tpu.vector_store %arg9[%c0_39, %c0_40], %55 {strides = array<i32>} : memref<16x32xf32, #tpu.memory_space<vmem>>, vector<16x32xf32>,
    } else {
    }
    %c0_15 = arith.constant 0 : index
    %c0_16 = arith.constant 0 : index
    %25 = vector.load %arg7[%c0_15, %c0_16] : memref<1x16xf32, #tpu.memory_space<vmem>>, vector<1x16xf32>
    %cst_17 = arith.constant dense<0xFF800000> : vector<16xf32>
    %26 = vector.multi_reduction <maximumf>, %4, %cst_17 [0] : vector<8x16xf32> to vector<16xf32>
    %27 = vector.shape_cast %26 : vector<16xf32> to vector<1x16xf32>
    %28 = arith.maximumf %25, %27 : vector<1x16xf32>
    %29 = arith.subf %25, %28 : vector<1x16xf32>
    %30 = math.exp %29 : vector<1x16xf32>
    %31 = vector.broadcast %28 : vector<1x16xf32> to vector<8x16xf32>
    %32 = arith.subf %4, %31 : vector<8x16xf32>
    %33 = math.exp %32 : vector<8x16xf32>
    %c0_18 = arith.constant 0 : index
    %c0_19 = arith.constant 0 : index
    %34 = vector.load %arg8[%c0_18, %c0_19] : memref<1x16xf32, #tpu.memory_space<vmem>>, vector<1x16xf32>
    %35 = arith.mulf %30, %34 : vector<1x16xf32>
    %cst_20 = arith.constant dense<0.000000e+00> : vector<16xf32>
    %36 = vector.multi_reduction <add>, %33, %cst_20 [0] : vector<8x16xf32> to vector<16xf32>
    %37 = vector.shape_cast %36 : vector<16xf32> to vector<1x16xf32>
    %38 = arith.addf %35, %37 : vector<1x16xf32>
    %c0_21 = arith.constant 0 : index
    %c0_22 = arith.constant 0 : index
    %39 = vector.load %arg8[%c0_21, %c0_22] : memref<1x16xf32, #tpu.memory_space<vmem>>, vector<1x16xf32>
    tpu.vector_store %arg8[%c0_21, %c0_22], %38 {strides = array<i32>} : memref<1x16xf32, #tpu.memory_space<vmem>>, vector<1x16xf32>,
    %cst_23 = arith.constant dense<0.000000e+00> : vector<16x32xf32>
    %40 = tpu.matmul %33, %1, %cst_23 {dimension_numbers = #tpu.dot_dimension_numbers<[0], [0], [1], [1], [0, 1, 1, 1], [], []>} : vector<8x16xf32>, vector<8x32xf32>, vector<16x32xf32> -> vector<16x32xf32>
    %c0_24 = arith.constant 0 : index
    %c0_25 = arith.constant 0 : index
    %41 = vector.load %arg9[%c0_24, %c0_25] : memref<16x32xf32, #tpu.memory_space<vmem>>, vector<16x32xf32>
    %42 = tpu.transpose %30, [1, 0] : vector<1x16xf32> -> vector<16x1xf32>
    %43 = vector.broadcast %42 : vector<16x1xf32> to vector<16x32xf32>
    %44 = arith.mulf %41, %43 : vector<16x32xf32>
    %45 = arith.addf %44, %40 : vector<16x32xf32>
    %c0_26 = arith.constant 0 : index
    %c0_27 = arith.constant 0 : index
    %46 = vector.load %arg9[%c0_26, %c0_27] : memref<16x32xf32, #tpu.memory_space<vmem>>, vector<16x32xf32>
    tpu.vector_store %arg9[%c0_26, %c0_27], %45 {strides = array<i32>} : memref<16x32xf32, #tpu.memory_space<vmem>>, vector<16x32xf32>,
    %c0_28 = arith.constant 0 : index
    %c0_29 = arith.constant 0 : index
    %47 = vector.load %arg7[%c0_28, %c0_29] : memref<1x16xf32, #tpu.memory_space<vmem>>, vector<1x16xf32>
    tpu.vector_store %arg7[%c0_28, %c0_29], %28 {strides = array<i32>} : memref<1x16xf32, #tpu.memory_space<vmem>>, vector<1x16xf32>,
    %c0_i32_30 = arith.constant 0 : i32
    %48 = arith.cmpi eq, %arg1, %c0_i32_30 : i32
    %49 = arith.extui %48 : i1 to i32
    %c0_i32_31 = arith.constant 0 : i32
    %50 = arith.cmpi ne, %49, %c0_i32_31 : i32
    scf.if %50 {
      %c0_32 = arith.constant 0 : index
      %c0_33 = arith.constant 0 : index
      %51 = vector.load %arg8[%c0_32, %c0_33] : memref<1x16xf32, #tpu.memory_space<vmem>>, vector<1x16xf32>
      %52 = tpu.reciprocal %51 {approx = true} : vector<1x16xf32> -> vector<1x16xf32>
      %c0_34 = arith.constant 0 : index
      %c0_35 = arith.constant 0 : index
      %53 = vector.load %arg9[%c0_34, %c0_35] : memref<16x32xf32, #tpu.memory_space<vmem>>, vector<16x32xf32>
      %54 = tpu.transpose %52, [1, 0] : vector<1x16xf32> -> vector<16x1xf32>
      %55 = vector.broadcast %54 : vector<16x1xf32> to vector<16x32xf32>
      %56 = arith.mulf %53, %55 : vector<16x32xf32>
      %c0_36 = arith.constant 0 : index
      %c0_37 = arith.constant 0 : index
      %c0_38 = arith.constant 0 : index
      %57 = vector.load %arg5[%c0_36, %c0_37, %c0_38] : memref<1x16x32xf32, #tpu.memory_space<vmem>>, vector<1x16x32xf32>
      %58 = vector.shape_cast %57 : vector<1x16x32xf32> to vector<16x32xf32>
      %59 = vector.shape_cast %56 : vector<16x32xf32> to vector<1x16x32xf32>
      tpu.vector_store %arg5[%c0_36, %c0_37, %c0_38], %59 {strides = array<i32>} : memref<1x16x32xf32, #tpu.memory_space<vmem>>, vector<1x16x32xf32>,
    } else {
    }
    return
  }
  func.func @transform_0(%arg0: i32, %arg1: i32) -> (i32, i32, i32) {
    %c0_i32 = arith.constant 0 : i32
    %c0_i32_0 = arith.constant 0 : i32
    return %arg0, %arg1, %c0_i32 : i32, i32, i32
  }
  func.func @transform_1(%arg0: i32, %arg1: i32) -> (i32, i32, i32) {
    %c0_i32 = arith.constant 0 : i32
    %c0_i32_0 = arith.constant 0 : i32
    %c0_i32_1 = arith.constant 0 : i32
    return %arg0, %c0_i32, %c0_i32_0 : i32, i32, i32
  }
  func.func @transform_2(%arg0: i32, %arg1: i32) -> (i32, i32, i32) {
    %c0_i32 = arith.constant 0 : i32
    %c0_i32_0 = arith.constant 0 : i32
    return %arg0, %arg1, %c0_i32 : i32, i32, i32
  }
  func.func @transform_3(%arg0: i32, %arg1: i32) -> (i32, i32, i32) {
    %c0_i32 = arith.constant 0 : i32
    %c0_i32_0 = arith.constant 0 : i32
    %c0_i32_1 = arith.constant 0 : i32
    return %arg0, %c0_i32, %c0_i32_0 : i32, i32, i32
  }
  func.func @transform_4(%arg0: i32, %arg1: i32) -> (i32, i32, i32) {
    %c0_i32 = arith.constant 0 : i32
    %c0_i32_0 = arith.constant 0 : i32
    return %arg0, %arg1, %c0_i32 : i32, i32, i32
  }
}

</mosaic_0001>

<bundles_post_ra>
// kernel: tpu_custom_call.1
= control target key start
LH: loop header
LB: loop body
LE: loop exit
PB: predicated region body
PF: predicated region fallthrough
CT: control target
= control target key end

     0   :  { %s1393_s0 = inlined_call_operand.hbm [shape: f32[2,8,32], index: 0, kind: input, shape index: {}]   ;;  %s1394_s1 = inlined_call_operand.hbm [shape: f32[2,16,32], index: 1, kind: input, shape index: {}]   ;;  %s1395_s2 = inlined_call_operand.hbm [shape: f32[2,8,32], index: 2, kind: output, shape index: {0}]   ;;  %s1396_s3 = inlined_call_operand.hbm [shape: f32[2,16,32], index: 3, kind: output, shape index: {1}]   ;;  %s1397_s4 = inlined_call_operand.hbm [shape: f32[2,8,16], index: 4, kind: output, shape index: {2}]  }
   0x1   :  { %1400 = sst [smem:[#allocation19_spill]] %s1393_s0 }
   0x2   :  { %10 = vsyncpa [#allocation6], 0 }
   0x3   :  { %12 = vsyncpa [#allocation6 + $0x1], 0 }
   0x4   :  { %13 = vsyncpa [#allocation9], 0 }
   0x5   :  { %15 = vsyncpa [#allocation9 + $0x1], 0 }
   0x6   :  { %16 = vsyncpa [#allocation7], 0 }
   0x7   :  { %18 = vsyncpa [#allocation7 + $0x1], 0 }
   0x8   :  { %19 = vsyncpa [#allocation12], 0 }
   0x9   :  { %21 = vsyncpa [#allocation12 + $0x1], 0  ;;  %s1164_s15 = smov 0   ;;  %s1166_s16 = smov 0  }
   0xa   :  { %s1168_s17 = smov 0   ;;  %s1170_s18 = smov 0  }
   0xb   :  { %s1172_s19 = smov 0   ;;  %s1174_s20 = smov 0  }
   0xc LB: > { %s1195_s21 = sadd.s32 4294967295, %s1130_s20   ;;  %s1398_s22 = sadd.s32 4294967294, %s1130_s20   ;;  %s1130_s20 = sphi %s1174_s20, %s27_s20   ;;  %s1126_s19 = sphi %s1172_s19, %s1414_s19   ;;  %s1122_s18 = sphi %s1170_s18, %s1413_s18   ;;  %s1118_s17 = sphi %s1168_s17, %s1412_s17   ;;  %s1114_s16 = sphi %s1166_s16, %s1411_s16   ;;  %s1110_s15 = sphi %s1164_s15, %s1410_s15  }
   0xd   : > { %s39_s23 = sadd.s32 1, %s1126_s19  ;;  %s48_s24 = sadd.s32 1, %s1118_s17 }
   0xe   : > { %p41_p0 = scmp.ge.s32.totalorder %s39_s23, 2  ;;  %p55_p1 = scmp.ne.s32.totalorder %s1118_s17, %s1114_s16 }
   0xf   : > { %p56_p2 = scmp.eq.s32.totalorder %s1130_s20, 0  ;;  %p61_p3 = scmp.ne.s32.totalorder %s1114_s16, %s1110_s15 }
  0x10   : > { %s1416_s23 = smov (%p41_p0, %s39_s23), 0  ;;  %p62_p5 = scmp.eq.s32.totalorder %s1195_s21, 0 }
  0x11   : > { %1401 = sst [smem:[#allocation18_spill]] %s1416_s23  ;;  %p1207_p4 = por %p56_p2, %p55_p1 }
  0x12   : > { %s43_s26 = ssub.s32 %s1126_s19, %s1416_s23  ;;  %p113_p6 = scmp.eq.s32.totalorder %s1195_s21, 1 }
  0x13   : > { %p46_p7 = scmp.eq.s32.totalorder %s43_s26, 0  ;;  %p1215_p8 = por %p62_p5, %p61_p3 }
  0x14   : > { %p1219_p9 = por %p113_p6, %p55_p1  ;;  %p119_p10 = scmp.eq.s32.totalorder %s1398_s22, 1 }
  0x15   : > { %s1226_s29 = scalar_select %p46_p7, %s1118_s17, %s48_s24  }
  0x16   : > { %p1228_p11 = por %p119_p10, %p61_p3  ;;  %p797_p12 = scmp.ge.s32.totalorder %s1130_s20, 2 }
  0x17   : > { %p854_p13 = scmp.lt.s32.totalorder %s1130_s20, 2  ;;  %s1235_s5 = sand.u32 1, %s1118_s17  }
  0x18   : > { %s798_s6 = sshll.u32 %s1235_s5, 3  ;;  %s799_s7 = sshll.u32 %s1126_s19, 3 }
  0x19   : > { %s1406_s0 = sld [smem:[#allocation19_spill]]  ;;  %s197_s11 = scalar_lea.vmem [#allocation5], %s798_s6 }
  0x1a   : > { %s206_s12 = sshll.u32 %s197_s11, 4  ;;  %p1244_p0 = pnand %p854_p13, %p1207_p4  ;;  %s207_s12 = int_to_ptr.vmem [resolvable:$true] %s206_s12 }
  0x1b   : > { %p803_p1 = scmp.ge.s32.totalorder %s1130_s20, 1  ;;  %p233_p2 = scmp.lt.s32.totalorder %s1130_s20, 3 }
  0x1c   : > { %s194_s24 = scalar_lea.sflag [#allocation6], %s1235_s5  ;;  %s800_s26 = sshll.u32 %s1235_s5, 4 }
  0x1d   : > { %p234_p3 = pnand %p803_p1, %p233_p2  ;;  %s824_s6 = sshll.u32 %s1126_s19, 4 }
  0x1e   : > { %s222_s9 = scalar_lea.hbm %s1394_s1, %s824_s6  ;;  %s214_s22 = scalar_lea.sflag [#allocation9], %s1235_s5 }
  0x1f   : > { %s202_s10 = scalar_lea.hbm %s1406_s0, %s799_s7  ;;  %s223_s11 = sshll.u32 %s222_s9, 4  ;;  %s224_s11 = int_to_ptr.hbm [resolvable:$true] %s223_s11 }
  0x20   : > { %s204_s13 = sshll.u32 %s202_s10, 4  ;;  %s217_s10 = scalar_lea.vmem [#allocation8], %s800_s26  ;;  %s205_s13 = int_to_ptr.hbm [resolvable:$true] %s204_s13 }
  0x21   : > { %840 = dma.hbm_to_vmem [thread:$0]  (!%p1244_p0), %s205_s13, 128, %s207_s12, %s194_s24  }
  0x22   : > { %s225_s25 = sshll.u32 %s217_s10, 4  ;;  %s1132_s0 = smov 128   ;;  %s226_s25 = int_to_ptr.vmem [resolvable:$true] %s225_s25 }
  0x23   : > { %s1133_s23 = smov 8   ;;  %237 = sbr.rel (%p234_p3) target bundleno = 654 (0x28e), region = 28 }
  0x24   : > { %843 = dma.hbm_to_vmem [thread:$0]  (!%p1244_p0), %s224_s11, 256, %s226_s25, %s214_s22, %s1132_s0, %s1132_s0, %s1133_s23  }
  0x25   : > { %s1262_s12 = sand.u32 (!%p234_p3), 1, %s1114_s16  }
  0x26   : > { %s1265_s13 = sshll.u32 (!%p234_p3), %s1262_s12, 3  ;;  %s240_s24 = scalar_lea.sflag (!%p234_p3), [#allocation6], %s1262_s12 }
  0x27   : > { %s243_s26 = scalar_lea.vmem (!%p234_p3), [#allocation5], %s1265_s13 }
  0x28   : > { %1093 = dma.done.wait (%p1215_p8), %s240_s24, 128  }
  0x29   : > { %1095 = vsyncadd (%p1215_p8), %s240_s24, 4294967168  ;;  %s805_s0 = sshll.u32 %s1262_s12, 4  ;;  %s250_s22 = scalar_lea.sflag [#allocation9], %s1262_s12 }
  0x2a   : > { %s253_s23 = scalar_lea.vmem [#allocation8], %s805_s0 }
  0x2b   : > { %1097 = dma.done.wait (%p1215_p8), %s250_s22, 256  }
  0x2c   : > { %1099 = vsyncadd (%p1215_p8), %s250_s22, 4294967040  ;;  %vm297_vm0 = vcmask 261120   ;;  %v296_v0 = vld [vmem:[%s253_s23 + $0x8] sm:$0xff]  ;;  %v295_v2 = vld [vmem:[%s253_s23] sm:$0xff]  ;;  %vm368_vm1 = vcmask 122880   ;;  %v1134_v3 = vmov -inf  }
  0x2d   : > { %809 = vmatpush.xpose.msk.msra.mxu0 %vm297_vm0, %v296_v0  ;;  %v294_v1 = vld [vmem:[%s243_s26] sm:$0xff]  ;;  %357 = vmatpush.msra.mxu1 %v296_v0  ;;  %369 = vst.msk [vmem:[#allocation2] sm:$0x1] %vm368_vm1, %v1134_v3  ;;  %v1135_v4 = vmov 0.0   ;;  %vm327_vm2 = vcmask 130048   ;;  %s293_s27 = scalar_lea.vmem [#allocation13], %s1265_s13 }
  0x2e   : > { %456 = vmatpush.msra.mxu2 %v294_v1  ;;  %826 = vmatpush.msra.mxu3 %v294_v1  ;;  %370 = vst.msk [vmem:[#allocation3] sm:$0x1] %vm368_vm1, %v1135_v4  ;;  %vm434_vm3 = vcmask 64512   ;;  %v1136_v40 = vmov 0   ;;  %s818_s5 = sshll.u32 %s1122_s18, 3  ;;  %s279_s8 = scalar_lea.vmem [#allocation10], %s1265_s13 }
  0x2f   : > { %358 = vmatpush.msra.mxu1 %v295_v2  ;;  %371 = vst.msk [vmem:[#allocation4] sm:$0xff] %vm297_vm0, %v1135_v4  ;;  %911 = vset.pattern.permute.xlu2 %v1136_v40  ;;  %s590_s7 = scalar_lea.hbm %s1395_s2, %s818_s5  ;;  %s592_s9 = sshll.u32 %s279_s8, 4  ;;  %s593_s9 = int_to_ptr.vmem [resolvable:$true] %s592_s9 }
  0x30   : > { %372 = vst.msk [vmem:[#allocation4 + $0x8] sm:$0xff] %vm297_vm0, %v1135_v4  ;;  %s594_s10 = sshll.u32 %s590_s7, 4  ;;  %s569_s25 = scalar_lea.sflag [#allocation7], %s1262_s12  ;;  %s595_s10 = int_to_ptr.hbm [resolvable:$true] %s594_s10 }
  0x31   : > { %810 = vmatpush.xpose.msk.msra.mxu0 %vm297_vm0, %v295_v2  ;;  %s998_s11 = sshra.s32 %s595_s10, 4  ;;  %s1004_s23 = scalar_lea.hbm %s1395_s2, 16  ;;  %s999_s11 = int_to_ptr.hbm [resolvable:$true] %s998_s11 }
  0x32   : > { %s1000_s24 = scalar_lea.hbm %s999_s11, 8  ;;  %p1005_p7 = scmp.lt.s32.totalorder %s999_s11, %s1395_s2 }
  0x33   : > { %p1001_p4 = scmp.ne.s32.totalorder %s999_s11, %s1000_s24  ;;  %p1006_p8 = scmp.lt.s32.totalorder %s1004_s23, %s1000_s24 }
  0x34   : > { %811 = vmatmul.msk.f32.vlgmr.msra.gmra.mxu0 %vm297_vm0, %v294_v1  ;;  %v373_v12 = vld [vmem:[#allocation2] sm:$0x1] }
  0x35   : > { %v390_v27 = vld [vmem:[#allocation3] sm:$0x1]  ;;  %p1002_p5 = pnand %p1001_p4, %p1219_p9  ;;  %p1007_p10 = por %p1006_p8, %p1005_p7 }
  0x36   : > { %v464_v49 = vld [vmem:[#allocation4] sm:$0xff] }
  0x37   : > { %p1003_p6 = pneg %p1002_p5 }
  0x39   : > { %p1008_p13 = pnand %p1007_p10, %p1003_p6 }
  0xb1   : > { %v324_v5 = vpop.f32.mrf.mxu0 }
  0xb2   : > { %328 = vst.msk [vmem:[%s293_s27] sm:$0xff] %vm327_vm2, %v324_v5  ;;  %v329_v6 = vsel %vm327_vm2, %v324_v5, -inf }
  0xb3   : > { %330 = vmax.xlane.f32.xlu0 %v329_v6  ;;  %v374_v7 = vrot.slane %v329_v6, 4 }
  0xb5   : > { %v375_v8 = vmax.f32 %v329_v6, %v374_v7 }
  0xb7   : > { %v376_v9 = vrot.slane %v375_v8, 2 }
  0xb9   : > { %v377_v10 = vmax.f32 %v375_v8, %v376_v9 }
  0xbb   : > { %v378_v11 = vrot.slane %v377_v10, 1 }
  0xbd   : > { %v379_v13 = vmax.f32 %v377_v10, %v378_v11 }
  0xbf   : > { %v380_v14 = vmax.f32 %v373_v12, %v379_v13 }
  0xc1   : > { %514 = vst.msk [vmem:[#allocation2] sm:$0x1] %vm368_vm1, %v380_v14  ;;  %v385_v15 = vperm.slane %v380_v14, 0  ;;  %v381_v18 = vsub.f32 %v373_v12, %v380_v14 }
  0xc3   : > { %v387_v16 = vsub.f32 %v324_v5, %v385_v15  ;;  %v382_v19 = vmul.f32 1.442695, %v381_v18 }
  0xc5   : > { %v388_v17 = vmul.f32 1.442695, %v387_v16 }
  0xc7   : > { %914 = vpow2.f32 %v388_v17 }
  0xc8   : > { %916 = vpow2.f32 %v382_v19 }
  0xcd   : > { %v915_v20 = vpop.eup %914 }
  0xce   : > { %402 = vxpose.xlu1.b32.start.end [1/1] (short) (narrow) %v915_v20, 16  ;;  %v392_v21 = vsel %vm327_vm2, %v915_v20, 0.0  ;;  %v917_v26 = vpop.eup %916 }
  0xcf   : > { %v393_v22 = vrot.slane %v392_v21, 4  ;;  %v391_v30 = vmul.f32 %v917_v26, %v390_v27 }
  0xd1   : > { %v394_v23 = vadd.f32 %v393_v22, %v392_v21 }
  0xd3   : > { %v395_v24 = vrot.slane %v394_v23, 2 }
  0xd5   : > { %v396_v25 = vadd.f32 %v395_v24, %v394_v23 }
  0xd7   : > { %v397_v28 = vrot.slane %v396_v25, 1 }
  0xd9   : > { %v398_v29 = vadd.f32 %v397_v28, %v396_v25 }
  0xdb   : > { %v399_v31 = vadd.f32 %v398_v29, %v391_v30 }
  0xdd   : > { %401 = vst.msk [vmem:[#allocation3] sm:$0x1] %vm368_vm1, %v399_v31 }
  0xde   : > { %466 = vxpose.xlu1.b32.start.end [1/1] (short) (narrow) %v917_v26, 16 }
  0xe4   : > { %v518_v37 = vld [vmem:[#allocation3] sm:$0x1] }
 0x126   : > { %v331_v32 = vpop.xlane.xlu0 %330 }
 0x127   : > { %v332_v33 = vsub.f32 %v324_v5, %v331_v32 }
 0x129   : > { %v333_v34 = vmul.f32 1.442695, %v332_v33 }
 0x12b   : > { %918 = vpow2.f32 %v333_v34 }
 0x12c   : > { %920 = vrcp.f32 %v518_v37 }
 0x131   : > { %v919_v35 = vpop.eup %918  ;;  %912 = vset.pattern.permute.xlu1 %v1136_v40 }
 0x132   : > { %v335_v36 = vsel %vm327_vm2, %v919_v35, 0.0  ;;  %v921_v38 = vpop.eup %920 }
 0x133   : > { %336 = vadd.xlane.f32.xlu0 %v335_v36 }
 0x15c   : > { %522 = vxpose.xlu0.b32.start.end [1/1] (short) (narrow) %v921_v38, 16 }
 0x172   : > { %v418_v39 = vpop.trf.xlu1 }
 0x173   : > { %813 = vmatmul.msk.f32.vlgmr.msra.gmra.mxu2 %vm434_vm3, %v418_v39 }
 0x17a   : > { %v419_v41 = vpop.trf.xlu1 }
 0x17b   : > { %814 = vmatmul.msk.f32.vlgmr.msra.gmra.mxu3 %vm434_vm3, %v419_v41 }
 0x182   : > { %v482_v42 = vpop.trf.xlu1 }
 0x183   : > { %500 = vperm.xlu2 %911, %v482_v42  }
 0x18a   : > { %v483_v44 = vpop.trf.xlu1 }
 0x18b   : > { %505 = vperm.xlu2 %911, %v483_v44  }
 0x1a6   : > { %v337_v43 = vpop.xlane.xlu0 %336 }
 0x1a7   : > { %922 = vrcp.f32 %v337_v43 }
 0x1ad   : > { %v923_v45 = vpop.eup %922 }
 0x1ae   : > { %v339_v46 = vmul.f32 %v923_v45, %v919_v35 }
 0x1b0   : > { %812 = vmatmul.msk.f32.vlgmr.msra.gmra.mxu1 %vm327_vm2, %v339_v46 }
 0x1c3   : > { %913 = vset.pattern.permute.xlu0 %v1136_v40 }
 0x1dd   : > { %v501_v50 = vpop.permute.xlu2 %500 }
 0x1de   : > { %v508_v51 = vmul.f32 %v501_v50, %v464_v49 }
 0x1f6   : > { %v458_v52 = vpop.f32.mrf.mxu2 }
 0x1f7   : > { %v510_v53 = vadd.f32 %v508_v51, %v458_v52 }
 0x1f9   : > { %512 = vst.msk [vmem:[#allocation4] sm:$0xff] %vm297_vm0, %v510_v53 }
 0x200   : > { %v538_v47 = vpop.trf.xlu0 }
 0x201   : > { %556 = vperm.xlu2 %911, %v538_v47  }
 0x208   : > { %v539_v48 = vpop.trf.xlu0 }
 0x209   : > { %561 = vperm.xlu1 %912, %v539_v48  }
 0x22d   : > { %v360_v54 = vpop.f32.mrf.mxu1 }
 0x22e   : > { %363 = vst.msk [vmem:[%s279_s8] sm:$0xff] %vm297_vm0, %v360_v54 }
 0x22f   : > { %1011 = shalt.err (!%p1008_p13)
}
 0x230   : > { %831 = dma.vmem_to_hbm [thread:$0]  (%p1219_p9), %s593_s9, 128, %s595_s10, %s569_s25   ;;  %v465_v55 = vld [vmem:[#allocation4 + $0x8] sm:$0xff]  ;;  %v506_v56 = vpop.permute.xlu2 %505  ;;  %v461_v58 = vpop.f32.mrf.mxu3  ;;  %v520_v60 = vld [vmem:[#allocation4] sm:$0xff] }
 0x231   : > { %v509_v57 = vmul.f32 %v506_v56, %v465_v55  ;;  %s286_s7 = scalar_lea.vmem [#allocation11], %s805_s0  ;;  %s825_s8 = sshll.u32 %s1122_s18, 4 }
 0x232   : > { %s605_s9 = scalar_lea.hbm %s1396_s3, %s825_s8  ;;  %s606_s10 = sshll.u32 %s286_s7, 4  ;;  %s607_s10 = int_to_ptr.vmem [resolvable:$true] %s606_s10 }
 0x233   : > { %v511_v59 = vadd.f32 %v509_v57, %v461_v58  ;;  %s622_s22 = scalar_lea.hbm %s1397_s4, %s818_s5  ;;  %s573_s23 = sand.u32 1, %s1195_s21  }
 0x234   : > { %s608_s14 = sshll.u32 %s605_s9, 4  ;;  %s1334_s6 = sshll.u32 %s293_s27, 4  ;;  %s609_s14 = int_to_ptr.hbm [resolvable:$true] %s608_s14  ;;  %s625_s6 = int_to_ptr.vmem [resolvable:$true] %s1334_s6 }
 0x235   : > { %513 = vst.msk [vmem:[#allocation4 + $0x8] sm:$0xff] %vm297_vm0, %v511_v59  ;;  %s626_s12 = sshll.u32 %s622_s22, 4  ;;  %s1340_s18 = scalar_lea.sflag [#allocation12], %s573_s23  ;;  %s1337_s12 = int_to_ptr.hbm [resolvable:$true] %s626_s12 }
 0x236   : > { %s1026_s21 = sshra.s32 %s609_s14, 4  ;;  %s1032_s5 = scalar_lea.hbm %s1396_s3, 32  ;;  %s1027_s21 = int_to_ptr.hbm [resolvable:$true] %s1026_s21 }
 0x237   : > { %s1028_s13 = scalar_lea.hbm %s1027_s21, 16  ;;  %p1033_p3 = scmp.lt.s32.totalorder %s1027_s21, %s1396_s3 }
 0x238   : > { %p1029_p0 = scmp.ne.s32.totalorder %s1027_s21, %s1028_s13  ;;  %p1034_p4 = scmp.lt.s32.totalorder %s1032_s5, %s1028_s13 }
 0x23a   : > { %p1030_p1 = pnand %p1029_p0, %p1219_p9  ;;  %p1035_p5 = por %p1034_p4, %p1033_p3 }
 0x23c   : > { %v521_v63 = vld [vmem:[#allocation4 + $0x8] sm:$0xff]  ;;  %p1031_p2 = pneg %p1030_p1 }
 0x23e   : > { %p1036_p6 = pnand %p1035_p5, %p1031_p2 }
 0x25b   : > { %v557_v61 = vpop.permute.xlu2 %556 }
 0x25c   : > { %v564_v62 = vmul.f32 %v557_v61, %v520_v60 }
 0x25e   : > { %566 = vst.msk [vmem:[%s286_s7] sm:$0xff] %vm297_vm0, %v564_v62 }
 0x27b   : > { %v562_v0 = vpop.permute.xlu1 %561 }
 0x27c   : > { %v565_v1 = vmul.f32 %v562_v0, %v521_v63 }
 0x27e   : > { %567 = vst.msk [vmem:[%s286_s7 + $0x8] sm:$0xff] %vm297_vm0, %v565_v1 }
 0x27f   : > { %1039 = shalt.err (!%p1036_p6)
}
 0x280   : > { %s1137_s7 = smov 128   ;;  %s1138_s24 = smov 8  }
 0x281   : > { %832 = dma.vmem_to_hbm [thread:$0]  (%p1219_p9), %s607_s10, 256, %s609_s14, %s1340_s18, %s1137_s7, %s1137_s7, %s1138_s24  }
 0x282   : > { %s1054_s9 = sshra.s32 %s1337_s12, 4  ;;  %s1060_s23 = scalar_lea.hbm %s1397_s4, 16  ;;  %s1055_s9 = int_to_ptr.hbm [resolvable:$true] %s1054_s9 }
 0x283   : > { %s1056_s25 = scalar_lea.hbm %s1055_s9, 8  ;;  %p1061_p13 = scmp.lt.s32.totalorder %s1055_s9, %s1397_s4 }
 0x284   : > { %p1057_p7 = scmp.ne.s32.totalorder %s1055_s9, %s1056_s25  ;;  %p1062_p0 = scmp.lt.s32.totalorder %s1060_s23, %s1056_s25 }
 0x286   : > { %p1058_p8 = pnand %p1057_p7, %p1219_p9  ;;  %p1063_p1 = por %p1062_p0, %p1061_p13 }
 0x288   : > { %p1059_p10 = pneg %p1058_p8 }
 0x28a   : > { %p1064_p2 = pnand %p1063_p1, %p1059_p10 }
 0x28c   : > { %1067 = shalt.err (!%p1064_p2)
}
 0x28d   : > { %833 = dma.vmem_to_hbm [thread:$0]  (%p1219_p9), %s625_s6, 128, %s1337_s12, %s1340_s18  }
 0x28e PF: > { %s638_s10 = sand.u32 1, %s1110_s15   ;;  %p845_p3 = pnand %p797_p12, %p1228_p11 }
 0x28f   : > { %s639_s14 = scalar_lea.sflag [#allocation7], %s638_s10 }
 0x290   : > { %p846_p4 = pneg %p845_p3 }
 0x292   : > { %1101 = dma.done.wait (%p846_p4), %s639_s14, 128  }
 0x293   : > { %1103 = vsyncadd (%p846_p4), %s639_s14, 4294967168  ;;  %s1408_s0 = sadd.s32 4294967294, %s1130_s20  }
 0x294   : > { %s648_s28 = sand.u32 1, %s1408_s0  }
 0x295   : > { %s649_s27 = scalar_lea.sflag [#allocation12], %s648_s28 }
 0x296   : > { %1105 = dma.done.wait (%p846_p4), %s649_s27, 384  }
 0x297   : > { %1107 = vsyncadd (%p846_p4), %s649_s27, 4294966912  ;;  %s27_s20 = sadd.s32 1, %s1130_s20   ;;  %s1409_s30 = sld [smem:[#allocation18_spill]] }
 0x298   : > { %p24_p9 = scmp.ge.s32.totalorder %s27_s20, 4   ;;  %s1410_s15 = smov %s1114_s16 }
 0x299   : > { %s1411_s16 = smov %s1118_s17  ;;  %s1412_s17 = smov %s1226_s29 }
 0x29a   : > { %s1413_s18 = smov %s1126_s19  ;;  %26 = sbr.rel (!%p24_p9) target bundleno = 12 (0xc), region = 126 }
 0x29d   : > { %s1414_s19 = smov %s1409_s30 }
 0x29f   :  { %665 = vsyncpa [#allocation6], 1 }
 0x2a0   :  { %667 = vsyncpa [#allocation6 + $0x1], 1 }
 0x2a1   :  { %668 = vsyncpa [#allocation9], 1 }
 0x2a2   :  { %670 = vsyncpa [#allocation9 + $0x1], 1 }
 0x2a3   :  { %671 = vsyncpa [#allocation7], 1 }
 0x2a4   :  { %673 = vsyncpa [#allocation7 + $0x1], 1 }
 0x2a5   :  { %674 = vsyncpa [#allocation12], 1 }
 0x2a6   :  { %676 = vsyncpa [#allocation12 + $0x1], 1 }

</bundles_post_ra>
